<compile_context>
chip_gen: v5e
topology: v5e:2x2
jax: 0.10.0
libtpu: 0.0.40
codegen_flags: <defaults>
</compile_context>

<pallas_src>
import math

import jax
import jax.numpy as jnp
from jax.experimental import pallas as pl
from jax.experimental.pallas import tpu as pltpu


# ---------------------------------------------------------------------------
# Deterministic parameter init (mirrors torch.nn.init.orthogonal_ + zero bias)
# ---------------------------------------------------------------------------
def orthogonal(key, out_dim, in_dim, gain):
    """Deterministic orthogonal init, same semantics as torch.nn.init.orthogonal_."""
    rows, cols = out_dim, in_dim
    flat = jax.random.normal(key, (rows, cols), dtype=jnp.float32)
    if rows < cols:
        flat = flat.T
    q, r = jnp.linalg.qr(flat)
    d = jnp.sign(jnp.diagonal(r))
    q = q * d[None, :]
    if rows < cols:
        q = q.T
    return gain * q  # (out_dim, in_dim), PyTorch weight convention


def init_actor_params(key, state_dim, hidden_sizes, action_dim):
    """Weights kept in PyTorch (out, in) orientation; biases as (out, 1) columns."""
    keys = jax.random.split(key, len(hidden_sizes) + 1)
    in_sizes = [state_dim] + list(hidden_sizes[:-1])
    params = []
    for k, d_in, d_out in zip(keys[:-1], in_sizes, hidden_sizes):
        w = orthogonal(k, d_out, d_in, gain=math.sqrt(2.0))           # (out, in)
        params.append((w, jnp.zeros((d_out, 1), jnp.float32)))
    wa = orthogonal(keys[-1], action_dim, hidden_sizes[-1], gain=math.sqrt(2.0) * 0.01)
    params.append((wa, jnp.zeros((action_dim, 1), jnp.float32)))
    return params


# ---------------------------------------------------------------------------
# Pallas kernel: fused MLP forward (transposed layout) + folded noise + tanh
# ---------------------------------------------------------------------------
def make_actor_kernel(n_hidden):
    def kernel(*refs):
        # refs = (state_T[bf16], w1, b1, ..., wn, bn, wa_pad, (ba+noise)_pad, out_T)
        h = refs[0][...]                                  # (state_dim, TB) bf16
        idx = 1
        for _ in range(n_hidden):
            w = refs[idx][...]                            # (d_out, d_in) bf16
            b = refs[idx + 1][...]                        # (d_out, 1)    f32
            idx += 2
            acc = jnp.dot(w, h, preferred_element_type=jnp.float32)   # f32 MXU acc
            # bias + ReLU in f32 (VPU), single cast to bf16 to feed next layer
            h = jnp.maximum(acc + b, 0.0).astype(jnp.bfloat16)
        wa = refs[idx][...]                               # (out_rows, d_last) bf16
        bn = refs[idx + 1][...]                           # (out_rows, 1) = bias + noise
        a = jnp.dot(wa, h, preferred_element_type=jnp.float32) + bn
        refs[idx + 2][...] = jnp.tanh(a)                  # (out_rows, TB) lane-dense

    return kernel


def _round_up(x, m):
    return ((x + m - 1) // m) * m


def _vmem_estimate(tb, state_dim, hidden_sizes, out_rows, param_bytes):
    """Rough per-block VMEM footprint (double-buffered IO + f32/bf16 temporaries)."""
    max_h = max(hidden_sizes)
    per_col = (2 * state_dim * 2      # double-buffered bf16 state block
               + 2 * out_rows * 4     # double-buffered f32 output block
               + max_h * 4            # f32 accumulator
               + max_h * 2)           # bf16 carried hidden activation
    return per_col * tb + param_bytes


def deterministic_actor_forward(state, params, exploration_std, noise_key,
                                deterministic=False, block_batch=8192):
    """Equivalent of DeterministicActor.forward(state, deterministic)."""
    batch, state_dim = state.shape
    action_dim = params[-1][0].shape[0]
    n_hidden = len(params) - 1
    hidden_sizes = [w.shape[0] for w, _ in params[:-1]]
    out_rows = _round_up(action_dim, 8)                    # full-sublane stores

    if deterministic:
        noise = jnp.zeros((action_dim, 1), jnp.float32)
    else:
        # matches torch: exploration_std * randn(action_dim), shared across batch
        noise = exploration_std * jax.random.normal(
            noise_key, (action_dim, 1), dtype=jnp.float32)

    # --- batch tiling ------------------------------------------------------
    # Lane-axis tile, multiple of 128; aim for >= 2 grid steps (v7x megacore),
    # cap at block_batch, shrink if the per-block VMEM footprint gets too big
    # (conservative budget that also fits v5e's 16 MiB scoped default).
    param_bytes = sum(int(w.size) * 2 + int(b.size) * 4 for w, b in params)
    lanes_batch = _round_up(batch, 128)
    tb = min(block_batch, _round_up(pl.cdiv(lanes_batch, 2), 128))
    tb = max(tb, 128)
    vmem_budget = 12 * 1024 * 1024
    while tb > 128 and _vmem_estimate(tb, state_dim, hidden_sizes,
                                      out_rows, param_bytes) > vmem_budget:
        tb = max(128, _round_up(tb // 2, 128))
    padded_batch = _round_up(batch, tb)
    grid = (padded_batch // tb,)

    # --- inputs: transpose + bf16 cast + pad fused in one expression --------
    state_t = state.astype(jnp.bfloat16).T                # (state_dim, batch) bf16
    if padded_batch != batch:
        state_t = jnp.pad(state_t, ((0, 0), (0, padded_batch - batch)))
    # TODO(synk): if the caller can provide states already in (state_dim, batch)
    # bf16 layout, this transpose pass disappears entirely.

    flat_args = [state_t]
    in_specs = [pl.BlockSpec((state_dim, tb), lambda i: (0, i))]
    for w, b in params[:-1]:
        flat_args += [w.astype(jnp.bfloat16), b]
        in_specs += [pl.BlockSpec(w.shape, lambda i: (0, 0)),   # resident weight
                     pl.BlockSpec(b.shape, lambda i: (0, 0))]   # resident bias
    wa, ba = params[-1]
    d_last = wa.shape[1]
    # pad final layer rows to out_rows (extra rows are zeros -> tanh(0)=0, sliced off)
    wa_pad = jnp.zeros((out_rows, d_last), jnp.float32).at[:action_dim].set(wa)
    bn_pad = jnp.zeros((out_rows, 1), jnp.float32).at[:action_dim].set(ba + noise)
    flat_args += [wa_pad.astype(jnp.bfloat16), bn_pad]          # folded bias + noise
    in_specs += [pl.BlockSpec((out_rows, d_last), lambda i: (0, 0)),
                 pl.BlockSpec((out_rows, 1), lambda i: (0, 0))]

    flops = 2 * padded_batch * sum(int(w.shape[0]) * int(w.shape[1]) for w, _ in params)
    bytes_accessed = (padded_batch * (state_dim * 2 + out_rows * 4) + param_bytes)
    cost = pl.CostEstimate(flops=flops,
                           transcendentals=padded_batch * out_rows,
                           bytes_accessed=bytes_accessed)

    out_t = pl.pallas_call(
        make_actor_kernel(n_hidden),
        out_shape=jax.ShapeDtypeStruct((out_rows, padded_batch), jnp.float32),
        grid=grid,
        in_specs=in_specs,
        out_specs=pl.BlockSpec((out_rows, tb), lambda i: (0, i)),
        compiler_params=pltpu.CompilerParams(
            dimension_semantics=("parallel",)),                 # megacore on v7x
        cost_estimate=cost,
    )(*flat_args)

    return out_t[:action_dim, :batch].T                         # (batch, action_dim)


# ---------------------------------------------------------------------------
# References
# ---------------------------------------------------------------------------
def reference_forward_bf16(state, params, noise):
    """Mirrors the kernel math: bf16 operands, f32 accumulate."""
    h = state.astype(jnp.bfloat16).T
    for w, b in params[:-1]:
        acc = jnp.dot(w.astype(jnp.bfloat16), h,
                      preferred_element_type=jnp.float32)
        h = jnp.maximum(acc + b, 0.0).astype(jnp.bfloat16)
    wa, ba = params[-1]
    a = jnp.dot(wa.astype(jnp.bfloat16), h,
                preferred_element_type=jnp.float32) + ba + noise
    return jnp.tanh(a).T


def reference_forward_f32(state, params, noise):
    """Pure f32 reference, matching the PyTorch module's math."""
    h = state.T
    for w, b in params[:-1]:
        h = jnp.maximum(jnp.dot(w, h) + b, 0.0)
    wa, ba = params[-1]
    return jnp.tanh(jnp.dot(wa, h) + ba + noise).T


if __name__ == "__main__":
    key = jax.random.PRNGKey(0)
    k_param, k_state, k_noise = jax.random.split(key, 3)

    batch = 2
    state_dim = 8
    hidden_sizes = [32, 32]
    action_dim = 4
    exploration_std = 0.1

    params = init_actor_params(k_param, state_dim, hidden_sizes, action_dim)
    state = jax.random.normal(k_state, (batch, state_dim), dtype=jnp.float32)

    # stochastic path (deterministic=False in the PyTorch module)
    action = deterministic_actor_forward(
        state, params, exploration_std, k_noise, deterministic=False)
    action = jax.block_until_ready(action)

    # deterministic path (deterministic=True)
    action_det = deterministic_actor_forward(
        state, params, exploration_std, k_noise, deterministic=True)
    action_det = jax.block_until_ready(action_det)

    # sanity checks
    noise = exploration_std * jax.random.normal(
        k_noise, (action_dim, 1), dtype=jnp.float32)
    zero_noise = jnp.zeros((action_dim, 1), jnp.float32)

    ref_bf = reference_forward_bf16(state, params, noise)
    ref_bf_det = reference_forward_bf16(state, params, zero_noise)
    ref_f32 = reference_forward_f32(state, params, noise)
    ref_f32_det = reference_forward_f32(state, params, zero_noise)

    assert action.shape == (batch, action_dim)
    assert jnp.allclose(action, ref_bf, atol=2e-3), "stochastic path mismatch (bf16 ref)"
    assert jnp.allclose(action_det, ref_bf_det, atol=2e-3), "deterministic path mismatch (bf16 ref)"
    # one-off comparison against the true f32 module math (bf16 quantization error)
    assert jnp.allclose(action, ref_f32, atol=5e-2), "stochastic path mismatch (f32 ref)"
    assert jnp.allclose(action_det, ref_f32_det, atol=5e-2), "deterministic path mismatch (f32 ref)"

    print("KERNEL_OK")
</pallas_src>

<mosaic_0001>
module attributes {stable_mosaic.version = 11 : i64} {
  func.func @kernel(%arg0: i32, %arg1: memref<8x128xbf16, #tpu.memory_space<vmem>>, %arg2: memref<32x8xbf16, #tpu.memory_space<vmem>>, %arg3: memref<32x1xf32, #tpu.memory_space<vmem>>, %arg4: memref<32x32xbf16, #tpu.memory_space<vmem>>, %arg5: memref<32x1xf32, #tpu.memory_space<vmem>>, %arg6: memref<8x32xbf16, #tpu.memory_space<vmem>>, %arg7: memref<8x1xf32, #tpu.memory_space<vmem>>, %arg8: memref<8x128xf32, #tpu.memory_space<vmem>>) attributes {dimension_semantics = [#tpu.dimension_semantics<parallel>], iteration_bounds = array<i64: 1>, scalar_prefetch = 0 : i64, scratch_operands = 0 : i64, tpu.core_type = #tpu.core_type<tc>, window_params = [{transform_indices = @transform_0, window_bounds = array<i64: 8, 128>}, {pipeline_mode = #tpu.pipeline_mode<synchronous>, transform_indices = @transform_1, window_bounds = array<i64: 32, 8>}, {pipeline_mode = #tpu.pipeline_mode<synchronous>, transform_indices = @transform_2, window_bounds = array<i64: 32, 1>}, {pipeline_mode = #tpu.pipeline_mode<synchronous>, transform_indices = @transform_3, window_bounds = array<i64: 32, 32>}, {pipeline_mode = #tpu.pipeline_mode<synchronous>, transform_indices = @transform_4, window_bounds = array<i64: 32, 1>}, {pipeline_mode = #tpu.pipeline_mode<synchronous>, transform_indices = @transform_5, window_bounds = array<i64: 8, 32>}, {pipeline_mode = #tpu.pipeline_mode<synchronous>, transform_indices = @transform_6, window_bounds = array<i64: 8, 1>}, {transform_indices = @transform_7, window_bounds = array<i64: 8, 128>}]} {
    %c0 = arith.constant 0 : index
    %c0_0 = arith.constant 0 : index
    %0 = vector.load %arg1[%c0, %c0_0] : memref<8x128xbf16, #tpu.memory_space<vmem>>, vector<8x128xbf16>
    %c0_1 = arith.constant 0 : index
    %c0_2 = arith.constant 0 : index
    %1 = vector.load %arg2[%c0_1, %c0_2] : memref<32x8xbf16, #tpu.memory_space<vmem>>, vector<32x8xbf16>
    %c0_3 = arith.constant 0 : index
    %c0_4 = arith.constant 0 : index
    %2 = vector.load %arg3[%c0_3, %c0_4] : memref<32x1xf32, #tpu.memory_space<vmem>>, vector<32x1xf32>
    %cst = arith.constant dense<0.000000e+00> : vector<32x128xf32>
    %3 = tpu.matmul %1, %0, %cst {dimension_numbers = #tpu.dot_dimension_numbers<[1], [0], [0], [1], [0, 0, 1, 1], [], []>} : vector<32x8xbf16>, vector<8x128xbf16>, vector<32x128xf32> -> vector<32x128xf32>
    %4 = vector.broadcast %2 : vector<32x1xf32> to vector<32x128xf32>
    %5 = arith.addf %3, %4 : vector<32x128xf32>
    %cst_5 = arith.constant 0.000000e+00 : f32
    %6 = vector.broadcast %cst_5 : f32 to vector<32x128xf32>
    %7 = arith.maximumf %5, %6 : vector<32x128xf32>
    %8 = arith.truncf %7 : vector<32x128xf32> to vector<32x128xbf16>
    %c0_6 = arith.constant 0 : index
    %c0_7 = arith.constant 0 : index
    %9 = vector.load %arg4[%c0_6, %c0_7] : memref<32x32xbf16, #tpu.memory_space<vmem>>, vector<32x32xbf16>
    %c0_8 = arith.constant 0 : index
    %c0_9 = arith.constant 0 : index
    %10 = vector.load %arg5[%c0_8, %c0_9] : memref<32x1xf32, #tpu.memory_space<vmem>>, vector<32x1xf32>
    %cst_10 = arith.constant dense<0.000000e+00> : vector<32x128xf32>
    %11 = tpu.matmul %9, %8, %cst_10 {dimension_numbers = #tpu.dot_dimension_numbers<[1], [0], [0], [1], [0, 0, 1, 1], [], []>} : vector<32x32xbf16>, vector<32x128xbf16>, vector<32x128xf32> -> vector<32x128xf32>
    %12 = vector.broadcast %10 : vector<32x1xf32> to vector<32x128xf32>
    %13 = arith.addf %11, %12 : vector<32x128xf32>
    %cst_11 = arith.constant 0.000000e+00 : f32
    %14 = vector.broadcast %cst_11 : f32 to vector<32x128xf32>
    %15 = arith.maximumf %13, %14 : vector<32x128xf32>
    %16 = arith.truncf %15 : vector<32x128xf32> to vector<32x128xbf16>
    %c0_12 = arith.constant 0 : index
    %c0_13 = arith.constant 0 : index
    %17 = vector.load %arg6[%c0_12, %c0_13] : memref<8x32xbf16, #tpu.memory_space<vmem>>, vector<8x32xbf16>
    %c0_14 = arith.constant 0 : index
    %c0_15 = arith.constant 0 : index
    %18 = vector.load %arg7[%c0_14, %c0_15] : memref<8x1xf32, #tpu.memory_space<vmem>>, vector<8x1xf32>
    %cst_16 = arith.constant dense<0.000000e+00> : vector<8x128xf32>
    %19 = tpu.matmul %17, %16, %cst_16 {dimension_numbers = #tpu.dot_dimension_numbers<[1], [0], [0], [1], [0, 0, 1, 1], [], []>} : vector<8x32xbf16>, vector<32x128xbf16>, vector<8x128xf32> -> vector<8x128xf32>
    %20 = vector.broadcast %18 : vector<8x1xf32> to vector<8x128xf32>
    %21 = arith.addf %19, %20 : vector<8x128xf32>
    %22 = math.tanh %21 : vector<8x128xf32>
    %c0_17 = arith.constant 0 : index
    %c0_18 = arith.constant 0 : index
    %23 = vector.load %arg8[%c0_17, %c0_18] : memref<8x128xf32, #tpu.memory_space<vmem>>, vector<8x128xf32>
    tpu.vector_store %arg8[%c0_17, %c0_18], %22 {strides = array<i32>} : memref<8x128xf32, #tpu.memory_space<vmem>>, vector<8x128xf32>,
    return
  }
  func.func @transform_0(%arg0: i32) -> (i32, i32) {
    %c0_i32 = arith.constant 0 : i32
    %c0_i32_0 = arith.constant 0 : i32
    return %c0_i32, %arg0 : i32, i32
  }
  func.func @transform_1(%arg0: i32) -> (i32, i32) {
    %c0_i32 = arith.constant 0 : i32
    %c0_i32_0 = arith.constant 0 : i32
    %c0_i32_1 = arith.constant 0 : i32
    return %c0_i32, %c0_i32_0 : i32, i32
  }
  func.func @transform_2(%arg0: i32) -> (i32, i32) {
    %c0_i32 = arith.constant 0 : i32
    %c0_i32_0 = arith.constant 0 : i32
    %c0_i32_1 = arith.constant 0 : i32
    return %c0_i32, %c0_i32_0 : i32, i32
  }
  func.func @transform_3(%arg0: i32) -> (i32, i32) {
    %c0_i32 = arith.constant 0 : i32
    %c0_i32_0 = arith.constant 0 : i32
    %c0_i32_1 = arith.constant 0 : i32
    return %c0_i32, %c0_i32_0 : i32, i32
  }
  func.func @transform_4(%arg0: i32) -> (i32, i32) {
    %c0_i32 = arith.constant 0 : i32
    %c0_i32_0 = arith.constant 0 : i32
    %c0_i32_1 = arith.constant 0 : i32
    return %c0_i32, %c0_i32_0 : i32, i32
  }
  func.func @transform_5(%arg0: i32) -> (i32, i32) {
    %c0_i32 = arith.constant 0 : i32
    %c0_i32_0 = arith.constant 0 : i32
    %c0_i32_1 = arith.constant 0 : i32
    return %c0_i32, %c0_i32_0 : i32, i32
  }
  func.func @transform_6(%arg0: i32) -> (i32, i32) {
    %c0_i32 = arith.constant 0 : i32
    %c0_i32_0 = arith.constant 0 : i32
    %c0_i32_1 = arith.constant 0 : i32
    return %c0_i32, %c0_i32_0 : i32, i32
  }
  func.func @transform_7(%arg0: i32) -> (i32, i32) {
    %c0_i32 = arith.constant 0 : i32
    %c0_i32_0 = arith.constant 0 : i32
    return %c0_i32, %arg0 : i32, i32
  }
}

</mosaic_0001>

<bundles_post_ra>
// kernel: tpu_custom_call.1
= control target key start
LH: loop header
LB: loop body
LE: loop exit
PB: predicated region body
PF: predicated region fallthrough
CT: control target
= control target key end

     0   :  { %vm74_vm0 = vcmask 1043456   ;;  %v274_v3 = vmov 0   ;;  %vm67_vm1 = vcmask 64512   ;;  %s367_s0 = inlined_call_operand.vmem [shape: bf16[8,128], index: 0, kind: input, shape index: {}]   ;;  %s368_s1 = inlined_call_operand.vmem [shape: bf16[32,8], index: 1, kind: input, shape index: {}]   ;;  %s369_s2 = inlined_call_operand.vmem [shape: f32[32,1], index: 2, kind: input, shape index: {}]   ;;  %s370_s3 = inlined_call_operand.vmem [shape: bf16[32,32], index: 3, kind: input, shape index: {}]   ;;  %s371_s4 = inlined_call_operand.vmem [shape: f32[32,1], index: 4, kind: input, shape index: {}]   ;;  %s372_s5 = inlined_call_operand.vmem [shape: bf16[8,32], index: 5, kind: input, shape index: {}]   ;;  %s373_s6 = inlined_call_operand.vmem [shape: f32[8,1], index: 6, kind: input, shape index: {}]   ;;  %s374_s7 = inlined_call_operand.hbm [shape: f32[8,128], index: 7, kind: output, shape index: {}]  }
   0x1   :  { %v28_v0 = vld [vmem:[%s367_s0] sm:$0xf]  ;;  %244 = vset.pattern.permute.xlu1 %v274_v3  ;;  %243 = vset.pattern.permute.xlu0 %v274_v3  ;;  %v35_v4 = vld [vmem:[%s369_s2 + $0x10] sm:$0xff] }
   0x2   :  { %v76_v1 = vsel %vm74_vm0, %v28_v0, 0  ;;  %v235_v2 = vld [vmem:[%s368_s1] sm:$0xff]  ;;  %49 = vperm.xlu0 %243, %v35_v4   ;;  %245 = vset.pattern.permute.xlu2 %v274_v3 }
   0x3   :  { %v33_v5 = vld [vmem:[%s369_s2] sm:$0xff]  ;;  %85 = vmatpush.bf16.msra.mxu0 %v76_v1 }
   0x4   :  { %39 = vperm.xlu1 %244, %v33_v5  }
   0x5   :  { %12 = vsyncpa [#allocation3], 0  ;;  %v36_v6 = vld [vmem:[%s369_s2 + $0x18] sm:$0xff]  ;;  %v34_v7 = vld [vmem:[%s369_s2 + $0x8] sm:$0xff]  ;;  %vm141_vm2 = vcmask 261120   ;;  %s275_s25 = smov [#allocation2]  }
   0x6   :  { %222 = vmatmul.msk.bf16.vlgmr.msra.gmra.mxu0 %vm67_vm1, %v235_v2  ;;  %v107_v8 = vld [vmem:[%s371_s4] sm:$0xff]  ;;  %v108_v9 = vld [vmem:[%s371_s4 + $0x8] sm:$0xff]  ;;  %v109_v12 = vld [vmem:[%s371_s4 + $0x10] sm:$0xff]  ;;  %s203_s26 = sshll.u32 %s275_s25, 4  ;;  %s205_s29 = sshll.u32 %s374_s7, 4  ;;  %s204_s26 = int_to_ptr.vmem [resolvable:$true] %s203_s26  ;;  %s206_s29 = int_to_ptr.hbm [resolvable:$true] %s205_s29 }
   0x7   :  { %v236_v10 = vld [vmem:[%s368_s1 + $0x8] sm:$0xff]  ;;  %123 = vperm.xlu2 %245, %v109_v12   ;;  %v110_v15 = vld [vmem:[%s371_s4 + $0x18] sm:$0xff]  ;;  %v174_v18 = vld [vmem:[%s373_s6] sm:$0xff] }
   0x8   :  { %v237_v32 = vld [vmem:[%s370_s3] sm:$0xff]  ;;  %v238_v33 = vld [vmem:[%s370_s3 + $0x8] sm:$0xff] }
   0x9   :  { %v173_v52 = vld [vmem:[%s372_s5] sm:$0xf] }
   0xa   :  { %54 = vperm.xlu0 %243, %v36_v6  }
   0xc   :  { %44 = vperm.xlu1 %244, %v34_v7  }
   0xf   :  { %128 = vperm.xlu2 %245, %v110_v15  }
  0x12   :  { %113 = vperm.xlu0 %243, %v107_v8  }
  0x14   :  { %118 = vperm.xlu1 %244, %v108_v9  }
  0x16   :  { %223 = vmatmul.msk.bf16.gmra.mxu0 %vm67_vm1, %v236_v10 }
  0x17   :  { %177 = vperm.xlu2 %245, %v174_v18  }
  0x61   :  { %v124_v35 = vpop.permute.xlu2 %123 }
  0x69   :  { %v129_v40 = vpop.permute.xlu2 %128 }
  0x71   :  { %v178_v53 = vpop.permute.xlu2 %177 }
  0x74   :  { %v50_v16 = vpop.permute.xlu0 %49 }
  0x76   :  { %v40_v14 = vpop.permute.xlu1 %39 }
  0x7c   :  { %v55_v21 = vpop.permute.xlu0 %54 }
  0x7e   :  { %v45_v19 = vpop.permute.xlu1 %44 }
  0x83   :  { %v87_v11 = vpop.f32.mrf.mxu0 }
  0x84   :  { %v88_v25 = vadd.f32 %v87_v11, %v40_v14  ;;  %v114_v44 = vpop.permute.xlu0 %113 }
  0x86   :  { %v97_v30 = vmax.f32 %v88_v25, 0.0  ;;  %v119_v38 = vpop.permute.xlu1 %118 }
  0x8b   :  { %v89_v13 = vpop.f32.mrf.mxu0 }
  0x8c   :  { %v90_v23 = vadd.f32 %v89_v13, %v45_v19 }
  0x8e   :  { %v98_v28 = vmax.f32 %v90_v23, 0.0 }
  0x90   :  { %v101_v31 = vpack.c.bf16 %v98_v28, %v97_v30 }
  0x93   :  { %v92_v17 = vpop.f32.mrf.mxu0 }
  0x94   :  { %v93_v20 = vadd.f32 %v92_v17, %v50_v16 }
  0x96   :  { %v99_v26 = vmax.f32 %v93_v20, 0.0 }
  0x9b   :  { %v94_v22 = vpop.f32.mrf.mxu0 }
  0x9c   :  { %v95_v24 = vadd.f32 %v94_v22, %v55_v21 }
  0x9e   :  { %v100_v27 = vmax.f32 %v95_v24, 0.0 }
  0xa0   :  { %v102_v29 = vpack.c.bf16 %v100_v27, %v99_v26 }
  0xa2   :  { %154 = vmatpush.bf16.msra.mxu1 %v102_v29  ;;  %239 = vmatpush.bf16.msra.mxu3 %v102_v29 }
  0xa6   :  { %155 = vmatpush.bf16.msra.mxu1 %v101_v31  ;;  %240 = vmatpush.bf16.msra.mxu3 %v101_v31 }
  0xa9   :  { %232 = vmatmul.msk.bf16.vlgmr.msra.gmra.mxu1 %vm141_vm2, %v237_v32  ;;  %233 = vmatmul.msk.bf16.vlgmr.msra.gmra.mxu3 %vm141_vm2, %v238_v33 }
 0x126   :  { %v157_v34 = vpop.f32.mrf.mxu1 }
 0x127   :  { %v158_v45 = vadd.f32 %v157_v34, %v114_v44 }
 0x129   :  { %v167_v50 = vmax.f32 %v158_v45, 0.0 }
 0x12c   :  { %v162_v36 = vpop.f32.mrf.mxu3 }
 0x12d   :  { %v163_v39 = vadd.f32 %v162_v36, %v124_v35 }
 0x12e   :  { %v159_v37 = vpop.f32.mrf.mxu1 }
 0x12f   :  { %v160_v42 = vadd.f32 %v159_v37, %v119_v38  ;;  %v169_v46 = vmax.f32 %v163_v39, 0.0 }
 0x131   :  { %v168_v48 = vmax.f32 %v160_v42, 0.0 }
 0x133   :  { %v171_v51 = vpack.c.bf16 %v168_v48, %v167_v50 }
 0x134   :  { %v164_v41 = vpop.f32.mrf.mxu3 }
 0x135   :  { %v165_v43 = vadd.f32 %v164_v41, %v129_v40 }
 0x137   :  { %v170_v47 = vmax.f32 %v165_v43, 0.0 }
 0x139   :  { %v172_v49 = vpack.c.bf16 %v170_v47, %v169_v46 }
 0x13b   :  { %189 = vmatpush.bf16.msra.mxu2 %v172_v49 }
 0x13f   :  { %190 = vmatpush.bf16.msra.mxu2 %v171_v51 }
 0x142   :  { %234 = vmatmul.msk.bf16.vlgmr.msra.gmra.mxu2 %vm141_vm2, %v173_v52 }
 0x1c5   :  { %v192_v54 = vpop.f32.mrf.mxu2 }
 0x1c6   :  { %v193_v55 = vadd.f32 %v192_v54, %v178_v53 }
 0x1c8   :  { %246 = vtanh.f32 %v193_v55 }
 0x1cd   :  { %v194_v56 = vpop.f32.mrf.mxu2 }
 0x1ce   :  { %v247_v57 = vpop.eup %246 }
 0x1cf   :  { %197 = vst [vmem:[#allocation2] sm:$0xff] %v247_v57 }
 0x1d0   :  { %208 = dma.vmem_to_hbm [thread:$0]  %s204_s26, 128, %s206_s29, [#allocation3]  }
 0x1d1   :  { %272 = dma.done.wait [#allocation3], 128  }
 0x1d2   :  { %273 = vsyncadd [#allocation3], 4294967168 }
 0x1d3   :  { %213 = vsyncpa [#allocation3], 1 }

</bundles_post_ra>
